<compile_context>
chip_gen: v6e
topology: v6e:2x2x1
jax: 0.10.0
libtpu: 0.0.40
codegen_flags: <defaults>
</compile_context>

<pallas_src>
import functools

import jax
import jax.numpy as jnp
from jax.experimental import pallas as pl
from jax.experimental.pallas import tpu as pltpu

LANES = 128                     # vreg lane width (fast axis)
SUBLANE_ALIGN = 32              # lcm of native sublane tiles: f32(8)/bf16(16)/int8(32)
TARGET_BLOCK_BYTES = 2 << 20    # ~2 MiB per input per block; x2 inputs x2 buffers = 8 MiB
NUM_SPLITS = 2                  # outer "parallel" axis: ~2x on multi-TC chips, no-op on 1-TC


def _round_up(a, b):
    return -(-a // b) * b


def _choose_tiling(rows, itemsize):
    """Pick (num_splits, row_tile, n_tiles_per_split) for a (rows, 128) slab."""
    if rows <= SUBLANE_ALIGN:
        # Tiny input: one block equal to the full array (always a legal block shape).
        return 1, rows, 1
    row_cap = max(SUBLANE_ALIGN, TARGET_BLOCK_BYTES // (LANES * itemsize))
    # Aim for >= 2 inner tiles per split so the BlockSpec pipeline can overlap DMA and
    # compute, without exceeding the ~2 MiB/block VMEM target.
    tiles_wanted = 2 * NUM_SPLITS
    row_tile = min(row_cap, _round_up(-(-rows // tiles_wanted), SUBLANE_ALIGN))
    total_tiles = -(-rows // row_tile)
    num_splits = NUM_SPLITS if total_tiles >= NUM_SPLITS else 1
    n_tiles_per_split = -(-total_tiles // num_splits)
    return num_splits, row_tile, n_tiles_per_split


def _to_f32(v):
    # Integer masks (uint8/int8/int32) go via int32 so the convert always lowers cleanly.
    if jnp.issubdtype(v.dtype, jnp.integer):
        return v.astype(jnp.int32).astype(jnp.float32)
    return v.astype(jnp.float32)


def _focal_loss_kernel(x_ref, t_ref, o_ref, *, alpha, gamma, rows, row_tile,
                       n_tiles_per_split, need_mask):
    # Output block = per-lane partial sums for this split; accumulator across the inner
    # "arbitrary" grid axis.
    @pl.when(pl.program_id(1) == 0)
    def _():
        o_ref[...] = jnp.zeros_like(o_ref)

    x = _to_f32(x_ref[...])
    t = _to_f32(t_ref[...])

    # Numerically stable BCE-with-logits (same as PyTorch):
    #   bce = max(x, 0) - x*t + log1p(exp(-|x|))
    z = jnp.exp(-jnp.abs(x))
    bce = jnp.maximum(x, 0.0) - x * t + jnp.log1p(z)
    pt = jnp.exp(-bce)
    one_m_pt = 1.0 - pt

    g = float(gamma)
    if g == 2.0:                       # module default: square on the VPU, not pow on EUP
        mod = jnp.square(one_m_pt)
    elif g == 0.0:
        mod = jnp.ones_like(one_m_pt)
    elif g == int(g) and 0 < g <= 4:   # other small integer gammas: repeated multiply
        mod = one_m_pt
        for _ in range(int(g) - 1):
            mod = mod * one_m_pt
    else:                              # general float gamma: fall back to pow
        mod = one_m_pt ** g

    focal = alpha * mod * bce

    if need_mask:
        # Zero out rows past the end of the array (grid overhang / partial last block).
        # Pure VPU work — free under the HBM-bound roofline.
        tile_idx = pl.program_id(0) * n_tiles_per_split + pl.program_id(1)
        row0 = tile_idx * row_tile
        row_ids = jax.lax.broadcasted_iota(jnp.int32, focal.shape, 0) + row0
        focal = jnp.where(row_ids < rows, focal, 0.0)

    o_ref[...] += jnp.sum(focal, axis=0, keepdims=True)


def _focal_elems(x, t, alpha, gamma):
    """Plain-JAX elementwise focal loss (used for the <128-element tail and the ref)."""
    x = x.astype(jnp.float32)
    t = t.astype(jnp.float32)
    bce = jnp.maximum(x, 0.0) - x * t + jnp.log1p(jnp.exp(-jnp.abs(x)))
    pt = jnp.exp(-bce)
    return alpha * (1.0 - pt) ** gamma * bce


def focal_loss(inputs, targets, alpha=0.25, gamma=2.0, reduction="mean"):
    """Focal loss on logits.  `inputs`/`targets` may have any shape (e.g. NCHW) and any
    dtype.  For large tensors prefer bf16 logits and uint8/int8 {0,1} targets: the kernel
    upcasts to f32 internally, and narrower source dtypes cut HBM bytes ~2.5x on the
    bandwidth-bound path."""
    assert inputs.shape == targets.shape
    total_elems = int(inputs.size)
    assert total_elems > 0
    alpha = float(alpha)
    gamma = float(gamma)

    x_flat = inputs.reshape(-1)
    t_flat = targets.reshape(-1)

    rows = total_elems // LANES
    main_elems = rows * LANES
    tail = total_elems - main_elems          # 0..127 leftover elements

    parts = []
    if rows > 0:
        # When total_elems % 128 == 0 (the common case for mask tensors) these reshapes
        # are zero-copy bitcasts of the row-major input; only odd sizes pay for a slice.
        x2 = (x_flat if tail == 0 else x_flat[:main_elems]).reshape(rows, LANES)
        t2 = (t_flat if tail == 0 else t_flat[:main_elems]).reshape(rows, LANES)

        itemsize = max(x2.dtype.itemsize, t2.dtype.itemsize)
        num_splits, row_tile, n_tiles_per_split = _choose_tiling(rows, itemsize)
        total_tiles = -(-rows // row_tile)
        last_block = total_tiles - 1
        # Mask only needed if the (num_splits * n_tiles_per_split * row_tile) grid
        # overhangs the array.
        need_mask = num_splits * n_tiles_per_split * row_tile > rows

        kernel = functools.partial(
            _focal_loss_kernel, alpha=alpha, gamma=gamma, rows=rows,
            row_tile=row_tile, n_tiles_per_split=n_tiles_per_split,
            need_mask=need_mask)

        def in_map(c, i):
            # Clamp so a fully-out-of-range logical tile (odd tile count split in 2)
            # re-reads the last valid block instead of issuing an OOB DMA; its
            # contribution is zeroed by the in-kernel row mask.
            return (jnp.minimum(c * n_tiles_per_split + i, last_block), 0)

        partials = pl.pallas_call(
            kernel,
            out_shape=jax.ShapeDtypeStruct((1, num_splits * LANES), jnp.float32),
            grid_spec=pltpu.PrefetchScalarGridSpec(
                num_scalar_prefetch=0,
                grid=(num_splits, n_tiles_per_split),
                in_specs=[
                    pl.BlockSpec((row_tile, LANES), in_map),
                    pl.BlockSpec((row_tile, LANES), in_map),
                ],
                out_specs=pl.BlockSpec((1, LANES), lambda c, i: (0, c)),
            ),
            compiler_params=pltpu.CompilerParams(
                dimension_semantics=("parallel", "arbitrary"),
            ),
        )(x2, t2)
        parts.append(jnp.sum(partials))

    if tail > 0:
        # Sub-128 tail: tiny plain-JAX epilogue (avoids relying on pad-value tricks).
        parts.append(jnp.sum(_focal_elems(x_flat[main_elems:], t_flat[main_elems:],
                                          alpha, gamma)))

    total = parts[0] if len(parts) == 1 else parts[0] + parts[1]

    if reduction == "mean":
        return total / total_elems
    if reduction == "sum":
        return total
    # TODO(synk): reduction='none' (per-element output) would need an elementwise
    # out_spec instead of the reduction path; not needed for the module's default.
    raise NotImplementedError(reduction)


def _focal_loss_ref(inputs, targets, alpha=0.25, gamma=2.0):
    return jnp.mean(_focal_elems(inputs, targets, float(alpha), float(gamma)))


if __name__ == "__main__":
    key = jax.random.PRNGKey(0)
    k1, k2, k3, k4, k5, k6 = jax.random.split(key, 6)

    # 1) NCHW predicted/ground-truth masks, like the PyTorch module (f32).
    B, C, H, W = 2, 4, 16, 16
    logits = jax.random.normal(k1, (B, C, H, W), dtype=jnp.float32) * 2.0
    targets = (jax.random.uniform(k2, (B, C, H, W)) > 0.5).astype(jnp.float32)
    out = jax.block_until_ready(focal_loss(logits, targets, alpha=0.25, gamma=2.0,
                                           reduction="mean"))
    ref = _focal_loss_ref(logits, targets)
    assert jnp.allclose(out, ref, rtol=1e-4, atol=1e-6), (out, ref)

    # 2) Size not divisible by 128: exercises the in-kernel row mask, the index-map
    #    clamp, and the plain-JAX tail epilogue.
    n_odd = 150 * 128 + 51
    logits2 = jax.random.normal(k3, (n_odd,), dtype=jnp.float32) * 3.0
    targets2 = (jax.random.uniform(k4, (n_odd,)) > 0.5).astype(jnp.float32)
    out2 = jax.block_until_ready(focal_loss(logits2, targets2))
    ref2 = _focal_loss_ref(logits2, targets2)
    assert jnp.allclose(out2, ref2, rtol=1e-4, atol=1e-6), (out2, ref2)

    # 3) Narrow source dtypes (bf16 logits, uint8 {0,1} targets): same math, fewer
    #    HBM bytes; the kernel upcasts to f32 internally.
    logits3 = (jax.random.normal(k5, (64, 512), dtype=jnp.float32) * 2.0).astype(jnp.bfloat16)
    targets3 = (jax.random.uniform(k6, (64, 512)) > 0.5).astype(jnp.uint8)
    out3 = jax.block_until_ready(focal_loss(logits3, targets3))
    ref3 = _focal_loss_ref(logits3.astype(jnp.float32), targets3.astype(jnp.float32))
    assert jnp.allclose(out3, ref3, rtol=2e-3, atol=1e-5), (out3, ref3)

    print("KERNEL_OK")
</pallas_src>

<mosaic_0001>
module attributes {stable_mosaic.version = 11 : i64} {
  func.func @_focal_loss_kernel(%arg0: i32, %arg1: i32, %arg2: memref<16x128xf32, #tpu.memory_space<vmem>>, %arg3: memref<16x128xf32, #tpu.memory_space<vmem>>, %arg4: memref<1x128xf32, #tpu.memory_space<vmem>>) attributes {dimension_semantics = [#tpu.dimension_semantics<parallel>, #tpu.dimension_semantics<arbitrary>], iteration_bounds = array<i64: 1, 1>, scalar_prefetch = 0 : i64, scratch_operands = 0 : i64, tpu.core_type = #tpu.core_type<tc>, window_params = [{transform_indices = @transform_0, window_bounds = array<i64: 16, 128>}, {transform_indices = @transform_1, window_bounds = array<i64: 16, 128>}, {transform_indices = @transform_2, window_bounds = array<i64: 1, 128>}]} {
    %c0_i32 = arith.constant 0 : i32
    %0 = arith.cmpi eq, %arg1, %c0_i32 : i32
    %1 = arith.extui %0 : i1 to i32
    %c0_i32_0 = arith.constant 0 : i32
    %2 = arith.cmpi ne, %1, %c0_i32_0 : i32
    scf.if %2 {
      %cst_13 = arith.constant 0.000000e+00 : f32
      %29 = vector.broadcast %cst_13 : f32 to vector<1x128xf32>
      %c0_14 = arith.constant 0 : index
      %c0_15 = arith.constant 0 : index
      %30 = vector.load %arg4[%c0_14, %c0_15] : memref<1x128xf32, #tpu.memory_space<vmem>>, vector<1x128xf32>
      tpu.vector_store %arg4[%c0_14, %c0_15], %29 {strides = array<i32>} : memref<1x128xf32, #tpu.memory_space<vmem>>, vector<1x128xf32>,
    } else {
    }
    %c0 = arith.constant 0 : index
    %c0_1 = arith.constant 0 : index
    %3 = vector.load %arg2[%c0, %c0_1] : memref<16x128xf32, #tpu.memory_space<vmem>>, vector<16x128xf32>
    %c0_2 = arith.constant 0 : index
    %c0_3 = arith.constant 0 : index
    %4 = vector.load %arg3[%c0_2, %c0_3] : memref<16x128xf32, #tpu.memory_space<vmem>>, vector<16x128xf32>
    %5 = math.absf %3 : vector<16x128xf32>
    %cst = arith.constant 0.000000e+00 : f32
    %6 = vector.broadcast %cst : f32 to vector<16x128xf32>
    %7 = arith.subf %6, %5 : vector<16x128xf32>
    %8 = math.exp %7 : vector<16x128xf32>
    %cst_4 = arith.constant 0.000000e+00 : f32
    %9 = vector.broadcast %cst_4 : f32 to vector<16x128xf32>
    %10 = arith.maximumf %3, %9 : vector<16x128xf32>
    %11 = arith.mulf %3, %4 : vector<16x128xf32>
    %12 = arith.subf %10, %11 : vector<16x128xf32>
    %13 = math.log1p %8 : vector<16x128xf32>
    %14 = arith.addf %12, %13 : vector<16x128xf32>
    %cst_5 = arith.constant 0.000000e+00 : f32
    %15 = vector.broadcast %cst_5 : f32 to vector<16x128xf32>
    %16 = arith.subf %15, %14 : vector<16x128xf32>
    %17 = math.exp %16 : vector<16x128xf32>
    %cst_6 = arith.constant 1.000000e+00 : f32
    %18 = vector.broadcast %cst_6 : f32 to vector<16x128xf32>
    %19 = arith.subf %18, %17 : vector<16x128xf32>
    %20 = arith.mulf %19, %19 : vector<16x128xf32>
    %cst_7 = arith.constant 2.500000e-01 : f32
    %21 = vector.broadcast %cst_7 : f32 to vector<16x128xf32>
    %22 = arith.mulf %21, %20 : vector<16x128xf32>
    %23 = arith.mulf %22, %14 : vector<16x128xf32>
    %c0_8 = arith.constant 0 : index
    %c0_9 = arith.constant 0 : index
    %24 = vector.load %arg4[%c0_8, %c0_9] : memref<1x128xf32, #tpu.memory_space<vmem>>, vector<1x128xf32>
    %cst_10 = arith.constant dense<0.000000e+00> : vector<128xf32>
    %25 = vector.multi_reduction <add>, %23, %cst_10 [0] : vector<16x128xf32> to vector<128xf32>
    %26 = vector.shape_cast %25 : vector<128xf32> to vector<1x128xf32>
    %27 = arith.addf %24, %26 : vector<1x128xf32>
    %c0_11 = arith.constant 0 : index
    %c0_12 = arith.constant 0 : index
    %28 = vector.load %arg4[%c0_11, %c0_12] : memref<1x128xf32, #tpu.memory_space<vmem>>, vector<1x128xf32>
    tpu.vector_store %arg4[%c0_11, %c0_12], %27 {strides = array<i32>} : memref<1x128xf32, #tpu.memory_space<vmem>>, vector<1x128xf32>,
    return
  }
  func.func @transform_0(%arg0: i32, %arg1: i32) -> (i32, i32) {
    %c1_i32 = arith.constant 1 : i32
    %0 = arith.muli %arg0, %c1_i32 : i32
    %1 = arith.addi %0, %arg1 : i32
    %c0_i32 = arith.constant 0 : i32
    %2 = arith.minsi %1, %c0_i32 : i32
    %c0_i32_0 = arith.constant 0 : i32
    %c0_i32_1 = arith.constant 0 : i32
    return %2, %c0_i32_0 : i32, i32
  }
  func.func @transform_1(%arg0: i32, %arg1: i32) -> (i32, i32) {
    %c1_i32 = arith.constant 1 : i32
    %0 = arith.muli %arg0, %c1_i32 : i32
    %1 = arith.addi %0, %arg1 : i32
    %c0_i32 = arith.constant 0 : i32
    %2 = arith.minsi %1, %c0_i32 : i32
    %c0_i32_0 = arith.constant 0 : i32
    %c0_i32_1 = arith.constant 0 : i32
    return %2, %c0_i32_0 : i32, i32
  }
  func.func @transform_2(%arg0: i32, %arg1: i32) -> (i32, i32) {
    %c0_i32 = arith.constant 0 : i32
    %c0_i32_0 = arith.constant 0 : i32
    return %c0_i32, %arg0 : i32, i32
  }
}

</mosaic_0001>

<bundles_post_ra>
// kernel: tpu_custom_call.1
= control target key start
LH: loop header
LB: loop body
LE: loop exit
PB: predicated region body
PF: predicated region fallthrough
CT: control target
= control target key end

     0   :  { %7 = vsyncpa [#allocation3], 0  ;;  %s261_s0 = inlined_call_operand.hbm [shape: f32[16,128], index: 0, kind: input, shape index: {}]   ;;  %s262_s1 = inlined_call_operand.hbm [shape: f32[16,128], index: 1, kind: input, shape index: {}]   ;;  %s263_s2 = inlined_call_operand.hbm [shape: f32[1,128], index: 2, kind: output, shape index: {}]  }
   0x1   :  { %8 = vsyncpa [#allocation6], 0 }
   0x2   :  { %9 = vsyncpa [#allocation4], 0  ;;  %s231_s9 = smov [#allocation2]  }
   0x3   :  { %s21_s10 = sshll.u32 %s231_s9, 4  ;;  %s22_s10 = int_to_ptr.vmem [resolvable:$true] %s21_s10 }
   0x4   :  { %s173_s11 = scalar_lea.vmem %s22_s10, 256  ;;  %p178_p1 = scmp.lt.s32.totalorder %s22_s10, %s22_s10 }
   0x5   :  { %p174_p0 = scmp.ne.s32.totalorder %s22_s10, %s173_s11  ;;  %p179_p2 = scmp.lt.s32.totalorder %s173_s11, %s173_s11 }
   0x7   :  { %p180_p3 = por %p179_p2, %p178_p1 }
   0x9   :  { %p181_p4 = pnand %p180_p3, %p174_p0 }
   0xb   :  { %184 = shalt.err (!%p181_p4)
}
   0xc   :  { %s232_s12 = smov 128   ;;  %s233_s13 = smov 8  }
   0xd   :  { %27 = dma.hbm_to_vmem [thread:$0]  %s261_s0, 256, %s22_s10, [#allocation3], %s232_s12, %s232_s12, %s233_s13  }
   0xe   :  { %s234_s16 = smov [#allocation5]  }
   0xf   :  { %s39_s17 = sshll.u32 %s234_s16, 4  ;;  %s40_s17 = int_to_ptr.vmem [resolvable:$true] %s39_s17 }
  0x10   :  { %s193_s18 = scalar_lea.vmem %s40_s17, 256  ;;  %p198_p6 = scmp.lt.s32.totalorder %s40_s17, %s40_s17 }
  0x11   :  { %p194_p5 = scmp.ne.s32.totalorder %s40_s17, %s193_s18  ;;  %p199_p7 = scmp.lt.s32.totalorder %s193_s18, %s193_s18 }
  0x13   :  { %p200_p8 = por %p199_p7, %p198_p6 }
  0x15   :  { %p201_p9 = pnand %p200_p8, %p194_p5 }
  0x17   :  { %204 = shalt.err (!%p201_p9)
}
  0x18   :  { %45 = dma.hbm_to_vmem [thread:$0]  %s262_s1, 256, %s40_s17, [#allocation6], %s232_s12, %s232_s12, %s233_s13  }
  0x19   :  { %225 = dma.done.wait [#allocation3], 256  }
  0x1a   :  { %226 = vsyncadd [#allocation3], 4294967040 }
  0x1b   :  { %227 = dma.done.wait [#allocation6], 256  }
  0x1c   :  { %228 = vsyncadd [#allocation6], 4294967040  ;;  %v235_v0 = vmov 0.0   ;;  %v65_v1 = vld [vmem:[#allocation2] sm:$0xff]  ;;  %v66_v2 = vld [vmem:[#allocation2 + $0x8] sm:$0xff]  ;;  %s236_s0 = smov [#allocation7]  }
  0x1d   :  { %64 = vst [vmem:[#allocation7] sm:$0x1] %v235_v0  ;;  %v69_v3 = vand.u32 2147483647, %v65_v1  ;;  %v70_v4 = vand.u32 2147483647, %v66_v2 }
  0x1e   :  { %v67_v15 = vld [vmem:[#allocation5] sm:$0xff]  ;;  %v68_v16 = vld [vmem:[#allocation5 + $0x8] sm:$0xff]  ;;  %v77_v18 = vmax.f32 %v65_v1, 0.0  ;;  %v78_v22 = vmax.f32 %v66_v2, 0.0  ;;  %s133_s1 = sshll.u32 %s236_s0, 4  ;;  %s134_s1 = int_to_ptr.vmem [resolvable:$true] %s133_s1 }
  0x1f   :  { %v71_v5 = vsub.f32 0.0, %v69_v3  ;;  %v72_v6 = vsub.f32 0.0, %v70_v4  ;;  %v79_v19 = vmul.f32 %v67_v15, %v65_v1  ;;  %v80_v23 = vmul.f32 %v68_v16, %v66_v2  ;;  %s205_s21 = scalar_lea.vmem %s134_s1, 16  ;;  %s209_s22 = scalar_lea.vmem %s134_s1, 32 }
  0x20   :  { %p206_p10 = scmp.ne.s32.totalorder %s134_s1, %s205_s21  ;;  %p210_p11 = scmp.lt.s32.totalorder %s134_s1, %s134_s1 }
  0x21   :  { %v73_v7 = vmul.f32 1.442695, %v71_v5  ;;  %v75_v8 = vmul.f32 1.442695, %v72_v6  ;;  %v81_v27 = vsub.f32 %v77_v18, %v79_v19  ;;  %v82_v30 = vsub.f32 %v78_v22, %v80_v23  ;;  %p211_p12 = scmp.lt.s32.totalorder %s209_s22, %s205_s21 }
  0x23   :  { %153 = vpow2.f32 %v73_v7  ;;  %p212_p13 = por %p211_p12, %p210_p11 }
  0x24   :  { %155 = vpow2.f32 %v75_v8  ;;  %v117_v57 = vld [vmem:[#allocation7] sm:$0x1] }
  0x25   :  { %p213_p0 = pnand %p212_p13, %p206_p10 }
  0x30   :  { %v154_v9 = vpop.eup %153 }
  0x31   :  { %v156_v10 = vpop.eup %155  ;;  %v83_v11 = vadd.f32 1.0, %v154_v9  ;;  %v86_v13 = vmul.f32 -0.5, %v154_v9  ;;  %v89_v20 = vand.u32 2147483647, %v154_v9 }
  0x32   :  { %v92_v12 = vadd.f32 1.0, %v156_v10  ;;  %v95_v14 = vmul.f32 -0.5, %v156_v10  ;;  %v98_v24 = vand.u32 2147483647, %v156_v10 }
  0x33   :  { %157 = vlog2.f32 %v83_v11  ;;  %v87_v17 = vadd.f32 1.0, %v86_v13  ;;  %vm90_vm0 = vcmp.lt.f32.partialorder %v89_v20, 0.0004427343 }
  0x34   :  { %159 = vlog2.f32 %v92_v12  ;;  %v96_v21 = vadd.f32 1.0, %v95_v14  ;;  %vm99_vm1 = vcmp.lt.f32.partialorder %v98_v24, 0.0004427343 }
  0x35   :  { %v88_v25 = vmul.f32 %v154_v9, %v87_v17 }
  0x36   :  { %v97_v28 = vmul.f32 %v156_v10, %v96_v21 }
  0x40   :  { %v158_v26 = vpop.eup %157 }
  0x41   :  { %v160_v29 = vpop.eup %159  ;;  %v85_v31 = vmul.f32 0.6931472, %v158_v26 }
  0x42   :  { %v94_v32 = vmul.f32 0.6931472, %v160_v29 }
  0x43   :  { %v91_v33 = vsel %vm90_vm0, %v88_v25, %v85_v31 }
  0x44   :  { %v100_v34 = vsel %vm99_vm1, %v97_v28, %v94_v32  ;;  %v101_v35 = vadd.f32 %v91_v33, %v81_v27 }
  0x45   :  { %v102_v36 = vadd.f32 %v100_v34, %v82_v30 }
  0x46   :  { %v103_v37 = vsub.f32 0.0, %v101_v35 }
  0x47   :  { %v104_v38 = vsub.f32 0.0, %v102_v36 }
  0x48   :  { %v105_v39 = vmul.f32 1.442695, %v103_v37 }
  0x49   :  { %v107_v40 = vmul.f32 1.442695, %v104_v38 }
  0x4a   :  { %161 = vpow2.f32 %v105_v39 }
  0x4b   :  { %163 = vpow2.f32 %v107_v40 }
  0x57   :  { %v162_v41 = vpop.eup %161 }
  0x58   :  { %v164_v42 = vpop.eup %163  ;;  %v109_v43 = vsub.f32 1.0, %v162_v41 }
  0x59   :  { %v110_v44 = vsub.f32 1.0, %v164_v42 }
  0x5a   :  { %v111_v45 = vmul.f32 %v109_v43, %v109_v43 }
  0x5b   :  { %v112_v46 = vmul.f32 %v110_v44, %v110_v44 }
  0x5c   :  { %v113_v47 = vmul.f32 0.25, %v111_v45 }
  0x5d   :  { %v114_v48 = vmul.f32 0.25, %v112_v46 }
  0x5e   :  { %v115_v49 = vmul.f32 %v113_v47, %v101_v35 }
  0x5f   :  { %v116_v50 = vmul.f32 %v114_v48, %v102_v36 }
  0x61   :  { %v118_v51 = vadd.f32 %v116_v50, %v115_v49 }
  0x63   :  { %v119_v52 = vrot.slane %v118_v51, 4 }
  0x65   :  { %v120_v53 = vadd.f32 %v119_v52, %v118_v51 }
  0x67   :  { %v121_v54 = vrot.slane %v120_v53, 2 }
  0x69   :  { %v122_v55 = vadd.f32 %v121_v54, %v120_v53 }
  0x6b   :  { %v123_v56 = vrot.slane %v122_v55, 1 }
  0x6d   :  { %v124_v58 = vadd.f32 %v123_v56, %v122_v55 }
  0x6f   :  { %v125_v59 = vadd.f32 %v124_v58, %v117_v57 }
  0x71   :  { %126 = vst [vmem:[#allocation7] sm:$0x1] %v125_v59 }
  0x72   :  { %216 = shalt.err (!%p213_p0)
}
  0x73   :  { %136 = dma.vmem_to_hbm [thread:$0]  %s134_s1, 16, %s263_s2, [#allocation4]  }
  0x74   :  { %229 = dma.done.wait [#allocation4], 16  }
  0x75   :  { %230 = vsyncadd [#allocation4], 4294967280 }
  0x76   :  { %140 = vsyncpa [#allocation3], 1 }
  0x77   :  { %141 = vsyncpa [#allocation6], 1 }
  0x78   :  { %142 = vsyncpa [#allocation4], 1 }

</bundles_post_ra>
